<compile_context>
chip_gen: v7x
topology: tpu7x:2x2x1
jax: 0.10.0
libtpu: 0.0.40
codegen_flags: <defaults>
</compile_context>

<pallas_src>
import math

import numpy as np
import jax
import jax.numpy as jnp
from jax import lax
from jax.experimental import pallas as pl
from jax.experimental.pallas import tpu as pltpu

_ANGLE_MIN = 100.0
_RAD2DEG = 180.0 / math.pi
_TILE_I = 8            # center-node rows per grid step (sublane granularity)
_LANE = 128

# Abramowitz & Stegun 4.4.46 acos polynomial (|err| <= 2e-8 rad), with the rad->deg
# conversion folded directly into the coefficients (one fewer [N,N] multiply per center).
_ACOS_COEFFS_DEG = tuple(c * _RAD2DEG for c in (
    -0.0012624911, 0.0066700901, -0.0170881256, 0.0308918810,
    -0.0501743046, 0.0889789874, -0.2145988016, 1.5707963050))


def _acos_deg_f32(x):
    """arccos in DEGREES for x in [-1, 1]; abs/mul/add/sqrt/where only (Mosaic-friendly)."""
    ax = jnp.abs(x)
    p = jnp.float32(_ACOS_COEFFS_DEG[0])
    for c in _ACOS_COEFFS_DEG[1:]:
        p = p * ax + jnp.float32(c)
    r = jnp.sqrt(jnp.maximum(jnp.float32(1.0) - ax, jnp.float32(0.0))) * p
    return jnp.where(x < 0.0, jnp.float32(180.0) - r, r)


def _bond_angle_kernel(x_ref, adj_ref, out_ref):
    t = pl.program_id(0)
    n = x_ref.shape[0]

    xv = x_ref[...]                                                   # [N, 128]
    # Gram matrix once per i-tile (MXU) -- hoisted out of the per-center loop.
    g = lax.dot_general(xv, xv, (((1,), (1,)), ((), ())),
                        preferred_element_type=jnp.float32)            # [N, N]
    rr = lax.broadcasted_iota(jnp.int32, (n, n), 0)
    cc = lax.broadcasted_iota(jnp.int32, (n, n), 1)
    upper = rr < cc                                                    # each pair once
    gdiag = jnp.where(rr == cc, g, jnp.float32(0.0))
    sq_col = jnp.sum(gdiag, axis=1, keepdims=True)                     # [N, 1] |x_j|^2
    sq_row = jnp.sum(gdiag, axis=0, keepdims=True)                     # [1, N] |x_k|^2

    def body(l, acc):
        i = t * _TILE_I + l                                            # global center idx
        x_i = x_ref[pl.ds(i, 1), :]                                    # [1, 128]
        gi_row = lax.dot_general(x_i, xv, (((1,), (1,)), ((), ())),
                                 preferred_element_type=jnp.float32)   # [1, N]  G[i, k]
        gi_col = lax.dot_general(xv, x_i, (((1,), (1,)), ((), ())),
                                 preferred_element_type=jnp.float32)   # [N, 1]  G[j, i]
        gii = lax.dot_general(x_i, x_i, (((1,), (1,)), ((), ())),
                              preferred_element_type=jnp.float32)      # [1, 1]  G[i, i]

        sqd_col = sq_col - 2.0 * gi_col + gii                          # |x_j - x_i|^2
        sqd_row = sq_row - 2.0 * gi_row + gii                          # |x_k - x_i|^2
        inv_col = lax.rsqrt(jnp.maximum(sqd_col, jnp.float32(1e-12)))  # EUP
        inv_row = lax.rsqrt(jnp.maximum(sqd_row, jnp.float32(1e-12)))

        num = (g - gi_row) + (gii - gi_col)                            # (x_j-x_i).(x_k-x_i)
        cosm = jnp.clip(num * (inv_col * inv_row), -1.0, 1.0)
        ang_deg = _acos_deg_f32(cosm)
        drift = jnp.maximum(jnp.float32(_ANGLE_MIN) - ang_deg, jnp.float32(0.0))
        drift = jnp.where(upper, drift, jnp.float32(0.0))              # [N, N]

        # quadratic form a_i^T * drift * a_i masks j and k with the adjacency row only.
        a_row = adj_ref[pl.ds(l, 1), :]                                # [1, N] adj[i, :]
        v = lax.dot_general(a_row, drift, (((1,), (0,)), ((), ())),
                            preferred_element_type=jnp.float32)        # [1, N]
        tot = lax.dot_general(v, a_row, (((1,), (1,)), ((), ())),
                              preferred_element_type=jnp.float32)      # [1, 1]
        return acc + tot

    acc = lax.fori_loop(0, _TILE_I, body, jnp.zeros((1, 1), jnp.float32))

    # write the per-tile partial sum into lane 0 / sublane 0 of this tile's output block.
    r8 = lax.broadcasted_iota(jnp.int32, (_TILE_I, _LANE), 0)
    c8 = lax.broadcasted_iota(jnp.int32, (_TILE_I, _LANE), 1)
    onehot = ((r8 == 0) & (c8 == 0)).astype(jnp.float32)
    out_ref[...] = onehot * acc


def bond_angle_guidance(x, e_type, e_index, scale):
    """Pallas TPU forward of BondAngleGuidance.

    x: [N, 3] float32, e_type: [E] int32 (0 == masked), e_index: [2, E] int32.
    Returns a float32 scalar (sum of clipped angle drifts). Degenerate (coincident-node)
    bond vectors are treated as 90 degrees instead of NaN."""
    n = x.shape[0]
    n_pad = max(_TILE_I, -(-n // _TILE_I) * _TILE_I)
    num_tiles = n_pad // _TILE_I

    # --- glue (plain JAX): padding + half->full-edge symmetric adjacency scatter ---
    x_pad = jnp.zeros((n_pad, _LANE), jnp.float32).at[:n, :3].set(x.astype(jnp.float32))
    valid = ((e_type != 0) & (e_index[0] != e_index[1])).astype(jnp.float32)
    adj = jnp.zeros((n_pad, n_pad), jnp.float32)
    adj = adj.at[e_index[0], e_index[1]].max(valid)
    adj = jnp.maximum(adj, adj.T)          # half_edge_to_full_edge: symmetric adjacency

    out = pl.pallas_call(
        _bond_angle_kernel,
        out_shape=jax.ShapeDtypeStruct((_TILE_I, num_tiles * _LANE), jnp.float32),
        grid=(num_tiles,),
        in_specs=[
            pl.BlockSpec((n_pad, _LANE), lambda t: (0, 0)),      # coords fully resident
            pl.BlockSpec((_TILE_I, n_pad), lambda t: (t, 0)),    # adjacency rows streamed
        ],
        out_specs=pl.BlockSpec((_TILE_I, _LANE), lambda t: (0, t)),
        compiler_params=pltpu.CompilerParams(dimension_semantics=("parallel",)),
    )(x_pad, adj)

    # each tile's partial sum is the only nonzero element of its (8,128) block.
    return jnp.float32(scale) * jnp.sum(out)


def _reference(x, e_type, e_index, scale, angle_min=100.0):
    """Pure-numpy mirror of the PyTorch forward (sanity check)."""
    x = np.asarray(x, dtype=np.float64)
    et, ei = np.asarray(e_type), np.asarray(e_index)
    n = x.shape[0]
    adj = np.zeros((n, n), dtype=bool)
    for t, a, b in zip(et, ei[0], ei[1]):
        if t != 0 and a != b:
            adj[a, b] = adj[b, a] = True
    total = 0.0
    for i in range(n):
        nbrs = np.nonzero(adj[i])[0]
        for a_i in range(len(nbrs)):
            for b_i in range(a_i + 1, len(nbrs)):
                j, k = nbrs[a_i], nbrs[b_i]
                v1, v2 = x[j] - x[i], x[k] - x[i]
                c = np.dot(v1, v2) / (np.linalg.norm(v1) * np.linalg.norm(v2))
                ang = np.degrees(np.arccos(np.clip(c, -1.0, 1.0)))
                total += scale * max(angle_min - ang, 0.0)
    return total


if __name__ == "__main__":
    key = jax.random.PRNGKey(0)
    N, E = 8, 10
    x = jax.random.normal(key, (N, 3), dtype=jnp.float32) * 1.5
    e_index = jnp.array([[0, 0, 1, 2, 3, 4, 5, 1, 2, 6],
                         [1, 2, 3, 4, 5, 6, 7, 4, 5, 7]], dtype=jnp.int32)
    e_type = jnp.array([1, 2, 1, 1, 3, 1, 2, 0, 1, 0], dtype=jnp.int32)  # two masked edges
    scale = 0.5

    out = bond_angle_guidance(x, e_type, e_index, scale)
    out = jax.block_until_ready(out)

    ref = _reference(np.asarray(x), np.asarray(e_type), np.asarray(e_index), scale)
    assert abs(float(out) - ref) <= 0.1 * abs(ref) + 1.0, (float(out), ref)
    print("KERNEL_OK")
</pallas_src>

<mosaic_0001>
module attributes {stable_mosaic.version = 11 : i64} {
  func.func @_bond_angle_kernel(%arg0: i32, %arg1: memref<8x128xf32, #tpu.memory_space<vmem>>, %arg2: memref<8x8xf32, #tpu.memory_space<vmem>>, %arg3: memref<8x128xf32, #tpu.memory_space<vmem>>) attributes {dimension_semantics = [#tpu.dimension_semantics<parallel>], iteration_bounds = array<i64: 1>, scalar_prefetch = 0 : i64, scratch_operands = 0 : i64, tpu.core_type = #tpu.core_type<tc>, window_params = [{pipeline_mode = #tpu.pipeline_mode<synchronous>, transform_indices = @transform_0, window_bounds = array<i64: 8, 128>}, {transform_indices = @transform_1, window_bounds = array<i64: 8, 8>}, {transform_indices = @transform_2, window_bounds = array<i64: 8, 128>}]} {
    %c0 = arith.constant 0 : index
    %c0_0 = arith.constant 0 : index
    %0 = vector.load %arg1[%c0, %c0_0] : memref<8x128xf32, #tpu.memory_space<vmem>>, vector<8x128xf32>
    %cst = arith.constant dense<0.000000e+00> : vector<8x8xf32>
    %1 = tpu.matmul %0, %0, %cst {dimension_numbers = #tpu.dot_dimension_numbers<[1], [1], [0], [0], [0, 0, 1, 0], [], []>} : vector<8x128xf32>, vector<8x128xf32>, vector<8x8xf32> -> vector<8x8xf32>
    %2 = tpu.iota {dimensions = array<i32: 0>} : vector<8x8xi32>
    %3 = tpu.iota {dimensions = array<i32: 1>} : vector<8x8xi32>
    %4 = arith.cmpi slt, %2, %3 : vector<8x8xi32>
    %5 = arith.cmpi eq, %2, %3 : vector<8x8xi32>
    %cst_1 = arith.constant 0.000000e+00 : f32
    %6 = vector.broadcast %cst_1 : f32 to vector<8x8xf32>
    %7 = arith.select %5, %1, %6 : vector<8x8xi1>, vector<8x8xf32>
    %cst_2 = arith.constant dense<0.000000e+00> : vector<8xf32>
    %8 = vector.multi_reduction <add>, %7, %cst_2 [1] : vector<8x8xf32> to vector<8xf32>
    %9 = vector.shape_cast %8 : vector<8xf32> to vector<8x1xf32>
    %cst_3 = arith.constant dense<0.000000e+00> : vector<8xf32>
    %10 = vector.multi_reduction <add>, %7, %cst_3 [0] : vector<8x8xf32> to vector<8xf32>
    %11 = vector.shape_cast %10 : vector<8xf32> to vector<1x8xf32>
    %cst_4 = arith.constant 0.000000e+00 : f32
    %12 = vector.broadcast %cst_4 : f32 to vector<1x1xf32>
    %c0_i32 = arith.constant 0 : i32
    %c8_i32 = arith.constant 8 : i32
    %13 = arith.addi %c0_i32, %c8_i32 : i32
    %c1_i32 = arith.constant 1 : i32
    %14 = scf.for %arg4 = %c0_i32 to %13 step %c1_i32 iter_args(%arg5 = %12) -> (vector<1x1xf32>)  : i32 {
      %c8_i32_10 = arith.constant 8 : i32
      %27 = arith.muli %arg0, %c8_i32_10 : i32
      %28 = arith.addi %27, %arg4 : i32
      %29 = arith.index_cast %28 : i32 to index
      %c0_11 = arith.constant 0 : index
      %30 = vector.load %arg1[%29, %c0_11] : memref<8x128xf32, #tpu.memory_space<vmem>>, vector<1x128xf32>
      %cst_12 = arith.constant dense<0.000000e+00> : vector<1x8xf32>
      %31 = tpu.matmul %30, %0, %cst_12 {dimension_numbers = #tpu.dot_dimension_numbers<[1], [1], [0], [0], [0, 0, 1, 0], [], []>} : vector<1x128xf32>, vector<8x128xf32>, vector<1x8xf32> -> vector<1x8xf32>
      %cst_13 = arith.constant dense<0.000000e+00> : vector<8x1xf32>
      %32 = tpu.matmul %0, %30, %cst_13 {dimension_numbers = #tpu.dot_dimension_numbers<[1], [1], [0], [0], [0, 0, 1, 0], [], []>} : vector<8x128xf32>, vector<1x128xf32>, vector<8x1xf32> -> vector<8x1xf32>
      %cst_14 = arith.constant dense<0.000000e+00> : vector<1x1xf32>
      %33 = tpu.matmul %30, %30, %cst_14 {dimension_numbers = #tpu.dot_dimension_numbers<[1], [1], [0], [0], [0, 0, 1, 0], [], []>} : vector<1x128xf32>, vector<1x128xf32>, vector<1x1xf32> -> vector<1x1xf32>
      %cst_15 = arith.constant 2.000000e+00 : f32
      %34 = vector.broadcast %cst_15 : f32 to vector<8x1xf32>
      %35 = arith.mulf %34, %32 : vector<8x1xf32>
      %36 = arith.subf %9, %35 : vector<8x1xf32>
      %37 = vector.broadcast %33 : vector<1x1xf32> to vector<8x1xf32>
      %38 = arith.addf %36, %37 : vector<8x1xf32>
      %cst_16 = arith.constant 2.000000e+00 : f32
      %39 = vector.broadcast %cst_16 : f32 to vector<1x8xf32>
      %40 = arith.mulf %39, %31 : vector<1x8xf32>
      %41 = arith.subf %11, %40 : vector<1x8xf32>
      %42 = vector.broadcast %33 : vector<1x1xf32> to vector<1x8xf32>
      %43 = arith.addf %41, %42 : vector<1x8xf32>
      %cst_17 = arith.constant 9.99999996E-13 : f32
      %44 = vector.broadcast %cst_17 : f32 to vector<8x1xf32>
      %45 = arith.maximumf %38, %44 : vector<8x1xf32>
      %46 = math.rsqrt %45 : vector<8x1xf32>
      %cst_18 = arith.constant 9.99999996E-13 : f32
      %47 = vector.broadcast %cst_18 : f32 to vector<1x8xf32>
      %48 = arith.maximumf %43, %47 : vector<1x8xf32>
      %49 = math.rsqrt %48 : vector<1x8xf32>
      %50 = vector.broadcast %31 : vector<1x8xf32> to vector<8x8xf32>
      %51 = arith.subf %1, %50 : vector<8x8xf32>
      %52 = vector.broadcast %33 : vector<1x1xf32> to vector<8x1xf32>
      %53 = arith.subf %52, %32 : vector<8x1xf32>
      %54 = vector.broadcast %53 : vector<8x1xf32> to vector<8x8xf32>
      %55 = arith.addf %51, %54 : vector<8x8xf32>
      %56 = vector.broadcast %46 : vector<8x1xf32> to vector<8x8xf32>
      %57 = vector.broadcast %49 : vector<1x8xf32> to vector<8x8xf32>
      %58 = arith.mulf %56, %57 : vector<8x8xf32>
      %59 = arith.mulf %55, %58 : vector<8x8xf32>
      %cst_19 = arith.constant -1.000000e+00 : f32
      %cst_20 = arith.constant 1.000000e+00 : f32
      %60 = vector.broadcast %cst_19 : f32 to vector<8x8xf32>
      %61 = arith.maximumf %60, %59 : vector<8x8xf32>
      %62 = vector.broadcast %cst_20 : f32 to vector<8x8xf32>
      %63 = arith.minimumf %62, %61 : vector<8x8xf32>
      %64 = math.absf %63 : vector<8x8xf32>
      %cst_21 = arith.constant -0.0723354146 : f32
      %65 = vector.broadcast %cst_21 : f32 to vector<8x8xf32>
      %66 = arith.mulf %65, %64 : vector<8x8xf32>
      %cst_22 = arith.constant 0.382168025 : f32
      %67 = vector.broadcast %cst_22 : f32 to vector<8x8xf32>
      %68 = arith.addf %66, %67 : vector<8x8xf32>
      %69 = arith.mulf %68, %64 : vector<8x8xf32>
      %cst_23 = arith.constant -0.979077458 : f32
      %70 = vector.broadcast %cst_23 : f32 to vector<8x8xf32>
      %71 = arith.addf %69, %70 : vector<8x8xf32>
      %72 = arith.mulf %71, %64 : vector<8x8xf32>
      %cst_24 = arith.constant 1.76997435 : f32
      %73 = vector.broadcast %cst_24 : f32 to vector<8x8xf32>
      %74 = arith.addf %72, %73 : vector<8x8xf32>
      %75 = arith.mulf %74, %64 : vector<8x8xf32>
      %cst_25 = arith.constant -2.87477589 : f32
      %76 = vector.broadcast %cst_25 : f32 to vector<8x8xf32>
      %77 = arith.addf %75, %76 : vector<8x8xf32>
      %78 = arith.mulf %77, %64 : vector<8x8xf32>
      %cst_26 = arith.constant 5.098120e+00 : f32
      %79 = vector.broadcast %cst_26 : f32 to vector<8x8xf32>
      %80 = arith.addf %78, %79 : vector<8x8xf32>
      %81 = arith.mulf %80, %64 : vector<8x8xf32>
      %cst_27 = arith.constant -12.2956057 : f32
      %82 = vector.broadcast %cst_27 : f32 to vector<8x8xf32>
      %83 = arith.addf %81, %82 : vector<8x8xf32>
      %84 = arith.mulf %83, %64 : vector<8x8xf32>
      %cst_28 = arith.constant 9.000000e+01 : f32
      %85 = vector.broadcast %cst_28 : f32 to vector<8x8xf32>
      %86 = arith.addf %84, %85 : vector<8x8xf32>
      %cst_29 = arith.constant 1.000000e+00 : f32
      %87 = vector.broadcast %cst_29 : f32 to vector<8x8xf32>
      %88 = arith.subf %87, %64 : vector<8x8xf32>
      %cst_30 = arith.constant 0.000000e+00 : f32
      %89 = vector.broadcast %cst_30 : f32 to vector<8x8xf32>
      %90 = arith.maximumf %88, %89 : vector<8x8xf32>
      %91 = math.sqrt %90 : vector<8x8xf32>
      %92 = arith.mulf %91, %86 : vector<8x8xf32>
      %cst_31 = arith.constant 0.000000e+00 : f32
      %93 = vector.broadcast %cst_31 : f32 to vector<8x8xf32>
      %94 = arith.cmpf olt, %63, %93 : vector<8x8xf32>
      %cst_32 = arith.constant 1.800000e+02 : f32
      %95 = vector.broadcast %cst_32 : f32 to vector<8x8xf32>
      %96 = arith.subf %95, %92 : vector<8x8xf32>
      %97 = arith.select %94, %96, %92 : vector<8x8xi1>, vector<8x8xf32>
      %cst_33 = arith.constant 1.000000e+02 : f32
      %98 = vector.broadcast %cst_33 : f32 to vector<8x8xf32>
      %99 = arith.subf %98, %97 : vector<8x8xf32>
      %cst_34 = arith.constant 0.000000e+00 : f32
      %100 = vector.broadcast %cst_34 : f32 to vector<8x8xf32>
      %101 = arith.maximumf %99, %100 : vector<8x8xf32>
      %cst_35 = arith.constant 0.000000e+00 : f32
      %102 = vector.broadcast %cst_35 : f32 to vector<8x8xf32>
      %103 = arith.select %4, %101, %102 : vector<8x8xi1>, vector<8x8xf32>
      %104 = arith.index_cast %arg4 : i32 to index
      %c0_36 = arith.constant 0 : index
      %105 = vector.load %arg2[%104, %c0_36] : memref<8x8xf32, #tpu.memory_space<vmem>>, vector<1x8xf32>
      %cst_37 = arith.constant dense<0.000000e+00> : vector<1x8xf32>
      %106 = tpu.matmul %105, %103, %cst_37 {dimension_numbers = #tpu.dot_dimension_numbers<[1], [0], [0], [1], [0, 0, 1, 1], [], []>} : vector<1x8xf32>, vector<8x8xf32>, vector<1x8xf32> -> vector<1x8xf32>
      %cst_38 = arith.constant dense<0.000000e+00> : vector<1x1xf32>
      %107 = tpu.matmul %106, %105, %cst_38 {dimension_numbers = #tpu.dot_dimension_numbers<[1], [1], [0], [0], [0, 0, 1, 0], [], []>} : vector<1x8xf32>, vector<1x8xf32>, vector<1x1xf32> -> vector<1x1xf32>
      %108 = arith.addf %arg5, %107 : vector<1x1xf32>
      scf.yield %108 : vector<1x1xf32>
    }
    %c8_i32_5 = arith.constant 8 : i32
    %15 = tpu.iota {dimensions = array<i32: 0>} : vector<8x128xi32>
    %16 = tpu.iota {dimensions = array<i32: 1>} : vector<8x128xi32>
    %c0_i32_6 = arith.constant 0 : i32
    %17 = vector.broadcast %c0_i32_6 : i32 to vector<8x128xi32>
    %18 = arith.cmpi eq, %15, %17 : vector<8x128xi32>
    %c0_i32_7 = arith.constant 0 : i32
    %19 = vector.broadcast %c0_i32_7 : i32 to vector<8x128xi32>
    %20 = arith.cmpi eq, %16, %19 : vector<8x128xi32>
    %21 = arith.andi %18, %20 : vector<8x128xi1>
    %22 = arith.extui %21 : vector<8x128xi1> to vector<8x128xi32>
    %23 = arith.sitofp %22 : vector<8x128xi32> to vector<8x128xf32>
    %24 = vector.broadcast %14 : vector<1x1xf32> to vector<8x128xf32>
    %25 = arith.mulf %23, %24 : vector<8x128xf32>
    %c0_8 = arith.constant 0 : index
    %c0_9 = arith.constant 0 : index
    %26 = vector.load %arg3[%c0_8, %c0_9] : memref<8x128xf32, #tpu.memory_space<vmem>>, vector<8x128xf32>
    tpu.vector_store %arg3[%c0_8, %c0_9], %25 {strides = array<i32>} : memref<8x128xf32, #tpu.memory_space<vmem>>, vector<8x128xf32>,
    return
  }
  func.func @transform_0(%arg0: i32) -> (i32, i32) {
    %c0_i32 = arith.constant 0 : i32
    %c0_i32_0 = arith.constant 0 : i32
    %c0_i32_1 = arith.constant 0 : i32
    return %c0_i32, %c0_i32_0 : i32, i32
  }
  func.func @transform_1(%arg0: i32) -> (i32, i32) {
    %c0_i32 = arith.constant 0 : i32
    %c0_i32_0 = arith.constant 0 : i32
    return %arg0, %c0_i32 : i32, i32
  }
  func.func @transform_2(%arg0: i32) -> (i32, i32) {
    %c0_i32 = arith.constant 0 : i32
    %c0_i32_0 = arith.constant 0 : i32
    return %c0_i32, %arg0 : i32, i32
  }
}

</mosaic_0001>

<bundles_post_ra>
// kernel: tpu_custom_call.1
= control target key start
LH: loop header
LB: loop body
LE: loop exit
PB: predicated region body
PF: predicated region fallthrough
CT: control target
= control target key end

     0   :  { %7 = vsyncpa [#allocation3], 0  ;;  %s655_s0 = inlined_call_operand.hbm [shape: f32[8,128], index: 0, kind: input, shape index: {}]   ;;  %s656_s1 = inlined_call_operand.hbm [shape: f32[8,8], index: 1, kind: input, shape index: {}]   ;;  %s657_s2 = inlined_call_operand.hbm [shape: f32[8,128], index: 2, kind: output, shape index: {}]  }
   0x1   :  { %8 = vsyncpa [#allocation6], 0 }
   0x2   :  { %9 = vsyncpa [#allocation4], 0  ;;  %s537_s9 = smov [#allocation2]   ;;  %s538_s11 = smov [#allocation5]  }
   0x3   :  { %s16_s10 = sshll.u32 %s537_s9, 4  ;;  %s26_s12 = sshll.u32 %s538_s11, 4  ;;  %s17_s10 = int_to_ptr.vmem [resolvable:$true] %s16_s10  ;;  %s27_s12 = int_to_ptr.vmem [resolvable:$true] %s26_s12 }
   0x4   :  { %s449_s15 = scalar_lea.hbm %s655_s0, 128 }
   0x5   :  { %p450_p0 = scmp.ne.s32.totalorder %s655_s0, %s449_s15  ;;  %p453_p1 = scmp.lt.u32.totalorder %s449_s15, %s655_s0 }
   0x7   :  { %p455_p2 = pnand %p453_p1, %p450_p0 }
   0x9   :  { %458 = shalt.err (!%p455_p2)
}
   0xa   :  { %s459_s20 = scalar_lea.vmem %s17_s10, 128  ;;  %p464_p4 = scmp.lt.s32.totalorder %s17_s10, %s17_s10 }
   0xb   :  { %p460_p3 = scmp.ne.s32.totalorder %s17_s10, %s459_s20  ;;  %p465_p5 = scmp.lt.s32.totalorder %s459_s20, %s459_s20 }
   0xd   :  { %p466_p6 = por %p465_p5, %p464_p4 }
   0xf   :  { %p467_p7 = pnand %p466_p6, %p460_p3 }
  0x11   :  { %470 = shalt.err (!%p467_p7)
}
  0x12   :  { %19 = dma.hbm_to_vmem [thread:$0]  %s655_s0, 128, %s17_s10, [#allocation3]  }
  0x13   :  { %s471_s25 = scalar_lea.hbm %s656_s1, 128 }
  0x14   :  { %p472_p8 = scmp.ne.s32.totalorder %s656_s1, %s471_s25  ;;  %p475_p9 = scmp.lt.u32.totalorder %s471_s25, %s656_s1 }
  0x16   :  { %p477_p10 = pnand %p475_p9, %p472_p8 }
  0x18   :  { %480 = shalt.err (!%p477_p10)
}
  0x19   :  { %s481_s30 = scalar_lea.vmem %s27_s12, 128  ;;  %p486_p12 = scmp.lt.s32.totalorder %s27_s12, %s27_s12 }
  0x1a   :  { %p482_p11 = scmp.ne.s32.totalorder %s27_s12, %s481_s30  ;;  %p487_p13 = scmp.lt.s32.totalorder %s481_s30, %s481_s30 }
  0x1c   :  { %p488_p0 = por %p487_p13, %p486_p12 }
  0x1e   :  { %p489_p1 = pnand %p488_p0, %p482_p11 }
  0x20   :  { %492 = shalt.err (!%p489_p1)
}
  0x21   :  { %29 = dma.hbm_to_vmem [thread:$0]  %s656_s1, 128, %s27_s12, [#allocation6]  }
  0x22   :  { %523 = dma.done.wait [#allocation3], 128  }
  0x23   :  { %524 = vsyncadd [#allocation3], 4294967168 }
  0x24   :  { %525 = dma.done.wait [#allocation6], 128  }
  0x25   :  { %526 = vsyncadd [#allocation6], 4294967168  ;;  %v539_v0 = vmov 0.0   ;;  %vm540_vm0 = vmmov 0   ;;  %v585_v1 = vld [vmem:[#allocation2] sm:$0xff]  ;;  %v107_v2 = vlaneseq  ;;  %vm114_vm3 = vcmask 64512  }
  0x26   :  { %405 = vmatprep.subr.mxu0 %v539_v0  ;;  %407 = vmatprep.mubr.msk.f32.mxu0 %vm540_vm0, %v539_v0  ;;  %v605_v16 = vmov 0.0   ;;  %s607_s1 = smov 0  }
  0x27   :  { %406 = vmatpush3.xpose.msra.mxu0 %v585_v1  ;;  %v589_v3 = vshrl.u32 %v107_v2, 7  ;;  %v591_v4 = vand.u32 127, %v107_v2 }
  0x29   :  { %vm111_vm1 = vcmp.lt.s32.totalorder %v589_v3, %v591_v4  ;;  %vm112_vm2 = vcmp.eq.s32.totalorder %v589_v3, %v591_v4 }
  0x2a   :  { %408 = vmatmul.mubr.f32.vlgmr.msra.gmra.mrb[0].mxu0 %v585_v1 }
  0xfd   :  { %v597_v5 = vpop.f32.mrb[0].mxu0 }
  0xfe   :  { %v113_v6 = vsel %vm112_vm2, %v597_v5, 0.0  ;;  %v409_v7 = vpop.f32.mrb[1].mxu0 }
  0xff   :  { %v115_v8 = vsel %vm114_vm3, %v113_v6, 0.0 }
 0x100   :  { %v118_v9 = vrot.slane %v115_v8, 4  ;;  %116 = vadd.xlane.f32.xlu0 %v115_v8 }
 0x102   :  { %v119_v10 = vadd.f32 %v118_v9, %v115_v8 }
 0x104   :  { %v120_v11 = vrot.slane %v119_v10, 2 }
 0x106   :  { %v121_v12 = vadd.f32 %v120_v11, %v119_v10 }
 0x108   :  { %v122_v13 = vrot.slane %v121_v12, 1 }
 0x10a   :  { %v601_v14 = vadd.f32 %v122_v13, %v121_v12 }
 0x18d   :  { %v603_v15 = vpop.xlane.xlu0 %116 }
 0x18e LB: > { %v616_v17 = vsub.s32 0, %v589_v3  ;;  %v541_v18 = vmov 0.0   ;;  %vm542_vm4 = vmmov 0   ;;  %s133_s4 = scalar_lea.vmem [#allocation2], %s535_s1  ;;  %vm213_vm5 = vcmask 1040384   ;;  %s277_s5 = scalar_lea.vmem [#allocation5], %s535_s1  ;;  %s535_s1 = sphi %s607_s1, %s129_s1   ;;  %v531_v16 = vphi %v605_v16, %v658_v16  }
 0x18f   : > { %410 = vmatprep.subr.mxu0 %v541_v18  ;;  %412 = vmatprep.mubr.msk.f32.mxu0 %vm542_vm4, %v541_v18  ;;  %v134_v19 = vld [vmem:[%s133_s4] sm:$0x1]  ;;  %vm353_vm9 = vcmask 57344   ;;  %s129_s1 = sadd.s32 1, %s535_s1  }
 0x190   : > { %411 = vmatpush3.xpose.msra.mxu0 %v585_v1  ;;  %415 = vmatprep.subr.mxu1 %v541_v18  ;;  %v208_v20 = vrot.slane %v134_v19, %v616_v17  ;;  %v212_v21 = vmul.f32 %v134_v19, %v134_v19  ;;  %p126_p2 = scmp.ge.s32.totalorder %s129_s1, 8  }
 0x191   : > { %417 = vmatprep.mubr.msk.f32.mxu1 %vm542_vm4, %v541_v18  ;;  %vm358_vm10 = vcmp.eq.s32.totalorder (%p126_p2), %v589_v3, 0  ;;  %vm359_vm11 = vcmp.eq.s32.totalorder (%p126_p2), %v591_v4, 0  ;;  %s543_s6 = smov (%p126_p2), [#allocation7]  }
 0x192   : > { %v209_v22 = vmul.f32 %v208_v20, %v585_v1  ;;  %v214_v23 = vsel %vm213_vm5, %v212_v21, 0.0  ;;  %vm360_vm12 = vmand (%p126_p2), %vm358_vm10, %vm359_vm11  ;;  %s375_s7 = sshll.u32 (%p126_p2), %s543_s6, 4  ;;  %s376_s7 = int_to_ptr.vmem [resolvable:$true] %s375_s7 }
 0x193   : > { %413 = vmatmul.mubr.f32.vlgmr.msra.gmra.mrb[0].mxu0 %v134_v19  ;;  %v278_v19 = vld [vmem:[%s277_s5] sm:$0x1]  ;;  %s493_s8 = scalar_lea.vmem (%p126_p2), %s376_s7, 128  ;;  %p498_p4 = scmp.lt.s32.totalorder (%p126_p2), %s376_s7, %s376_s7 }
 0x194   : > { %210 = vadd.xlane.f32.xlu0 %v209_v22  ;;  %p494_p3 = scmp.ne.s32.totalorder (%p126_p2), %s376_s7, %s493_s8  ;;  %p499_p5 = scmp.lt.s32.totalorder (%p126_p2), %s493_s8, %s493_s8 }
 0x196   :  { %p500_p6 = por (%p126_p2), %p499_p5, %p498_p4 }
 0x198   : > { %215 = vadd.xlane.f32.xlu0 %v214_v23  ;;  %p501_p7 = pnand (%p126_p2), %p500_p6, %p494_p3 }
 0x221   : > { %v211_v24 = vpop.xlane.xlu0 %210 }
 0x222   : > { %v217_v25 = vmul.f32 2.0, %v211_v24 }
 0x224   : > { %v218_v27 = vsub.f32 %v603_v15, %v217_v25 }
 0x225   : > { %v216_v26 = vpop.xlane.xlu0 %215 }
 0x226   : > { %v222_v29 = vrot.slane %v216_v26, %v616_v17 }
 0x228   : > { %v223_v32 = vadd.f32 %v222_v29, %v218_v27  ;;  %v236_v40 = vsub.f32 %v222_v29, %v211_v24  ;;  %v398_v27 = vsel (%p126_p2), %vm360_vm12, 1.0, %v539_v0 }
 0x22a   : > { %v227_v35 = vmax.f32 %v223_v32, 1e-12 }
 0x266   : > { %v201_v28 = vpop.f32.mrb[0].mxu0 }
 0x267   : > { %v224_v30 = vmul.f32 2.0, %v201_v28  ;;  %v414_v31 = vpop.f32.mrb[1].mxu0  ;;  %v234_v37 = vrot.slane %v201_v28, %v616_v17 }
 0x269   : > { %v225_v33 = vsub.f32 %v601_v14, %v224_v30  ;;  %v235_v38 = vsub.f32 %v597_v5, %v234_v37 }
 0x26b   : > { %v226_v34 = vadd.f32 %v225_v33, %v216_v26  ;;  %v237_v43 = vadd.f32 %v236_v40, %v235_v38 }
 0x26d   : > { %v229_v36 = vmax.f32 %v226_v34, 1e-12 }
 0x26f   : > { %443 = vrsqrt.f32 %v229_v36 }
 0x270   : > { %445 = vrsqrt.f32 %v227_v35 }
 0x279   : > { %v444_v39 = vpop.eup %443 }
 0x27a   : > { %v241_v41 = vrot.slane %v444_v39, %v616_v17  ;;  %v446_v42 = vpop.eup %445 }
 0x27c   : > { %v242_v44 = vmul.f32 %v446_v42, %v241_v41 }
 0x27e   : > { %v243_v45 = vmul.f32 %v242_v44, %v237_v43 }
 0x280   : > { %v395_v46 = vclamps-f32 %v243_v45, 1.0 }
 0x282   : > { %v246_v47 = vand.u32 2147483647, %v395_v46  ;;  %vm271_vm8 = vcmp.lt.f32.partialorder %v395_v46, 0.0 }
 0x284   : > { %v247_v48 = vmul.f32 -0.072335415, %v246_v47  ;;  %v261_v49 = vsub.f32 1.0, %v246_v47 }
 0x286   : > { %v248_v50 = vadd.f32 0.38216802, %v247_v48  ;;  %v262_v51 = vmax.f32 %v261_v49, 0.0 }
 0x288   : > { %v249_v52 = vmul.f32 %v248_v50, %v246_v47  ;;  %447 = vrsqrt.f32 %v262_v51  ;;  %vm265_vm6 = vcmp.eq.f32.partialorder %v262_v51, inf  ;;  %v268_v7 = vand.u32 2147483648, %v262_v51 }
 0x289   : > { %vm267_vm7 = vcmp.eq.f32.partialorder %v262_v51, 0.0 }
 0x28a   : > { %v250_v53 = vadd.f32 -0.97907746, %v249_v52 }
 0x28c   : > { %v251_v54 = vmul.f32 %v250_v53, %v246_v47 }
 0x28e   : > { %v252_v55 = vadd.f32 1.7699744, %v251_v54 }
 0x290   : > { %v253_v56 = vmul.f32 %v252_v55, %v246_v47 }
 0x292   : > { %v254_v57 = vadd.f32 -2.874776, %v253_v56  ;;  %v448_v59 = vpop.eup %447 }
 0x293   : > { %v264_v62 = vmul.f32 %v448_v59, %v262_v51 }
 0x294   : > { %v255_v58 = vmul.f32 %v254_v57, %v246_v47 }
 0x295   : > { %v266_v6 = vsel %vm265_vm6, %v262_v51, %v264_v62 }
 0x296   : > { %v256_v60 = vadd.f32 5.09812, %v255_v58  ;;  %v269_v9 = vsel %vm267_vm7, %v268_v7, %v266_v6 }
 0x298   : > { %v257_v61 = vmul.f32 %v256_v60, %v246_v47 }
 0x29a   : > { %v258_v63 = vadd.f32 -12.295606, %v257_v61 }
 0x29c   : > { %v259_v2 = vmul.f32 %v258_v63, %v246_v47 }
 0x29e   : > { %v260_v8 = vadd.f32 90.0, %v259_v2 }
 0x2a0   : > { %v270_v10 = vmul.f32 %v269_v9, %v260_v8 }
 0x2a2   : > { %v272_v11 = vsub.f32 180.0, %v270_v10 }
 0x2a4   : > { %v273_v12 = vsel %vm271_vm8, %v272_v11, %v270_v10 }
 0x2a5   : > { %v274_v13 = vsub.f32 100.0, %v273_v12 }
 0x2a7   : > { %v275_v18 = vmax.f32 %v274_v13, 0.0 }
 0x2a9   : > { %416 = vmatpush3.msk.msra.mxu1 %vm111_vm1, %v275_v18 }
 0x2aa   : > { %418 = vmatmul.mubr.msk.f32.vlgmr.msra.gmra.mrb[0].mxu1 %vm114_vm3, %v278_v19 }
 0x37d   : > { %v348_v20 = vpop.f32.mrb[0].mxu1 }
 0x37e   : > { %v352_v21 = vmul.f32 %v348_v20, %v278_v19  ;;  %v419_v22 = vpop.f32.mrb[1].mxu1 }
 0x380   : > { %v354_v23 = vsel %vm353_vm9, %v352_v21, 0.0 }
 0x381   : > { %355 = vadd.xlane.f32.xlu1 %v354_v23 }
 0x40b   :  { %128 = sbr.rel (!%p126_p2) target bundleno = 398 (0x18e), region = 45 }
 0x40e   : > { %v356_v24 = vpop.xlane.xlu1 %355 }
 0x40f   : > { %v357_v25 = vadd.f32 %v531_v16, %v356_v24  }
 0x411   : > { %v658_v16 = vmov %v357_v25  ;;  %v366_v26 = vrot.slane (%p126_p2), %v357_v25, %v616_v17 }
 0x413   :  { %v367_v16 = vmul.f32 %v398_v27, %v366_v26 }
 0x415   :  { %368 = vst [vmem:[#allocation7] sm:$0xff] %v367_v16 }
 0x416   :  { %504 = shalt.err (!%p501_p7)
}
 0x417   :  { %s505_s11 = scalar_lea.hbm %s657_s2, 128 }
 0x418   :  { %p506_p8 = scmp.ne.s32.totalorder %s657_s2, %s505_s11  ;;  %p509_p9 = scmp.lt.u32.totalorder %s505_s11, %s657_s2 }
 0x41a   :  { %p511_p10 = pnand %p509_p9, %p506_p8 }
 0x41c   :  { %514 = shalt.err (!%p511_p10)
}
 0x41d   :  { %378 = dma.vmem_to_hbm [thread:$0]  %s376_s7, 128, %s657_s2, [#allocation4]  }
 0x41e   :  { %527 = dma.done.wait [#allocation4], 128  }
 0x41f   :  { %528 = vsyncadd [#allocation4], 4294967168 }
 0x420   :  { %382 = vsyncpa [#allocation3], 1 }
 0x421   :  { %383 = vsyncpa [#allocation6], 1 }
 0x422   :  { %384 = vsyncpa [#allocation4], 1 }

</bundles_post_ra>
